<compile_context>
chip_gen: v7x
topology: tpu7x:2x2x1
jax: 0.10.0
libtpu: 0.0.40
codegen_flags: <defaults>
</compile_context>

<pallas_src>
import math
import functools

import jax
import jax.numpy as jnp
from jax import lax
from jax.experimental import pallas as pl
from jax.experimental.pallas import tpu as pltpu


def _round_up(x, m):
    return (x + m - 1) // m * m


def _linear_kernel(seed_ref, x_ref, w_ref, o_ref, acc_ref, *,
                   dropout_p, training, k_total):
    """One (tm, tn) output tile, accumulated over the K grid axis."""
    @pl.when(pl.program_id(2) == 0)
    def _init():
        acc_ref[...] = jnp.zeros_like(acc_ref)

    x = x_ref[...]

    apply_dropout = bool(training) and dropout_p > 0.0
    if apply_dropout:
        tm, tk = x.shape
        i = pl.program_id(0)
        k = pl.program_id(2)
        # Global element coordinates of this x tile (independent of j so the
        # same x element always gets the same mask).
        row = lax.broadcasted_iota(jnp.int32, (tm, tk), 0) + i * tm
        col = lax.broadcasted_iota(jnp.int32, (tm, tk), 1) + k * tk
        idx = row * k_total + col
        # Murmur3-style integer finalizer mixed with the seed (VPU-only ops;
        # runs as filler under the MXU).
        h = idx.astype(jnp.uint32) * jnp.uint32(0x9E3779B1)
        h = h + seed_ref[0].astype(jnp.uint32) * jnp.uint32(0x7FEB352D)
        h = h ^ (h >> 16)
        h = h * jnp.uint32(0x85EBCA6B)
        h = h ^ (h >> 13)
        h = h * jnp.uint32(0xC2B2AE35)
        h = h ^ (h >> 16)
        # P(drop) ~= dropout_p.
        # TODO(synk): p == 1.0 is capped slightly below 1, so the output is not
        # exactly all-zero as in PyTorch's degenerate p=1 case.
        p_eff = min(float(dropout_p), 0.9999999)
        thresh = jnp.uint32(min(int(p_eff * 4294967296.0), 4294967295))
        keep = h >= thresh
        x = jnp.where(keep, x, jnp.zeros_like(x))

    # Feed operands in their native dtype (bf16 stays bf16); accumulate in f32.
    acc_ref[...] += jnp.dot(x, w_ref[...], preferred_element_type=jnp.float32)

    # 1/(1-p) dropout scale folded into the epilogue (exact: (s*x) @ W == s*(x@W)).
    scale = 1.0 / (1.0 - min(float(dropout_p), 0.9999999)) if apply_dropout else 1.0

    @pl.when(pl.program_id(2) == pl.num_programs(2) - 1)
    def _finalize():
        acc = acc_ref[...]
        if scale != 1.0:
            acc = acc * jnp.float32(scale)
        o_ref[...] = acc.astype(o_ref.dtype)


def linear_forward(x, weight, *, dropout_p=0.0, training=False, seed=0,
                   tm=256, tn=256, tk=512):
    """Pallas equivalent of Linear.forward (bias=False).

    x: (batch, in_features), weight: (in_features, out_features).
    Default tiles (256, 256, 512) fit comfortably in VMEM on v5e/v6e/v7x with
    double buffering; tiles shrink automatically for small inputs.
    """
    M, K = x.shape
    K2, N = weight.shape
    assert K == K2, "in_features mismatch"
    out_dtype = x.dtype

    # Adapt tiles to small shapes while keeping (8, 128) alignment; lane-dense
    # (multiple-of-128) N/K, sublane-aligned M.  Small batch => single M block.
    tm = min(tm, _round_up(M, 8))
    tn = min(tn, _round_up(N, 128))
    tk = min(tk, _round_up(K, 128))

    M_pad = _round_up(M, tm)
    K_pad = _round_up(K, tk)
    N_pad = _round_up(N, tn)

    if (M_pad, K_pad) != (M, K):
        x = jnp.pad(x, ((0, M_pad - M), (0, K_pad - K)))
    if (K_pad, N_pad) != (K, N):
        weight = jnp.pad(weight, ((0, K_pad - K), (0, N_pad - N)))

    grid = (M_pad // tm, N_pad // tn, K_pad // tk)
    seed_arr = jnp.array([seed], dtype=jnp.int32)

    kernel = functools.partial(
        _linear_kernel,
        dropout_p=float(dropout_p),
        training=bool(training),
        k_total=int(K_pad),
    )

    cost = pl.CostEstimate(
        flops=2 * M_pad * N_pad * K_pad,
        transcendentals=0,
        bytes_accessed=(x.size * x.dtype.itemsize
                        + weight.size * weight.dtype.itemsize
                        + M_pad * N_pad * jnp.dtype(out_dtype).itemsize),
    )

    out = pl.pallas_call(
        kernel,
        out_shape=jax.ShapeDtypeStruct((M_pad, N_pad), out_dtype),
        grid_spec=pltpu.PrefetchScalarGridSpec(
            num_scalar_prefetch=1,          # seed lands in SMEM
            grid=grid,
            in_specs=[
                pl.BlockSpec((tm, tk), lambda i, j, k, seed: (i, k)),
                pl.BlockSpec((tk, tn), lambda i, j, k, seed: (k, j)),
            ],
            out_specs=pl.BlockSpec((tm, tn), lambda i, j, k, seed: (i, j)),
            scratch_shapes=[pltpu.VMEM((tm, tn), jnp.float32)],
        ),
        compiler_params=pltpu.CompilerParams(
            dimension_semantics=("parallel", "parallel", "arbitrary"),
        ),
        cost_estimate=cost,
    )(seed_arr, x, weight)

    return out[:M, :N]


def init_linear_params(key, in_features, out_features):
    """Deterministic re-implementation of reset_parameters():
    kaiming_uniform_(weight, mode='fan_out', a=sqrt(5)) on weight of shape
    (in_features, out_features).  fan_out = size(0) = in_features;
    gain = sqrt(2/(1+5)); bound = gain*sqrt(3/fan) = 1/sqrt(in_features)."""
    bound = 1.0 / math.sqrt(in_features)
    return jax.random.uniform(
        key, (in_features, out_features), dtype=jnp.float32,
        minval=-bound, maxval=bound,
    )
    # TODO(synk): bias path omitted (module default bias=False); would be a
    # broadcast-add inside the finalize epilogue if needed.


if __name__ == "__main__":
    batch = 8
    in_features = 32
    out_features = 32
    dropout_p = 0.5

    key = jax.random.PRNGKey(0)
    k_w, k_x, k_w2, k_x2 = jax.random.split(key, 4)

    # Case 1: tiny shapes (wrapper pads N/K up to 128 for lane-dense stores).
    weight = init_linear_params(k_w, in_features, out_features)
    x = jax.random.normal(k_x, (batch, in_features), dtype=jnp.float32)

    out_eval = jax.block_until_ready(
        linear_forward(x, weight, dropout_p=dropout_p, training=False))
    assert out_eval.shape == (batch, out_features)
    assert jnp.allclose(out_eval, x @ weight, atol=1e-5, rtol=1e-5), \
        "eval-mode mismatch vs reference"

    # Case 2: larger K with a small K tile to exercise the K-accumulation loop.
    in2, out2 = 256, 128
    w2 = init_linear_params(k_w2, in2, out2)
    x2 = jax.random.normal(k_x2, (batch, in2), dtype=jnp.float32)

    out2_eval = jax.block_until_ready(
        linear_forward(x2, w2, dropout_p=dropout_p, training=False, tk=128))
    assert jnp.allclose(out2_eval, x2 @ w2, atol=1e-4, rtol=1e-4), \
        "tiled eval-mode mismatch vs reference"

    # Training mode: in-kernel hash-PRNG dropout; check it runs and is sane.
    out_train = jax.block_until_ready(
        linear_forward(x2, w2, dropout_p=dropout_p, training=True,
                       seed=1234, tk=128))
    assert out_train.shape == (batch, out2)
    assert bool(jnp.all(jnp.isfinite(out_train)))

    print("KERNEL_OK")
</pallas_src>

<mosaic_0001>
module attributes {stable_mosaic.version = 11 : i64} {
  func.func @_linear_kernel(%arg0: i32, %arg1: i32, %arg2: i32, %arg3: memref<1xi32, #tpu.memory_space<smem>>, %arg4: memref<8x128xf32, #tpu.memory_space<vmem>>, %arg5: memref<128x128xf32, #tpu.memory_space<vmem>>, %arg6: memref<8x128xf32, #tpu.memory_space<vmem>>, %arg7: memref<8x128xf32, #tpu.memory_space<vmem>>) attributes {dimension_semantics = [#tpu.dimension_semantics<parallel>, #tpu.dimension_semantics<parallel>, #tpu.dimension_semantics<arbitrary>], iteration_bounds = array<i64: 1, 1, 1>, scalar_prefetch = 1 : i64, scratch_operands = 1 : i64, tpu.core_type = #tpu.core_type<tc>, window_params = [{transform_indices = @transform_0, window_bounds = array<i64: 8, 128>}, {transform_indices = @transform_1, window_bounds = array<i64: 128, 128>}, {transform_indices = @transform_2, window_bounds = array<i64: 8, 128>}]} {
    %c0_i32 = arith.constant 0 : i32
    %0 = arith.cmpi eq, %arg2, %c0_i32 : i32
    %1 = arith.extui %0 : i1 to i32
    %c0_i32_0 = arith.constant 0 : i32
    %2 = arith.cmpi ne, %1, %c0_i32_0 : i32
    scf.if %2 {
      %cst_10 = arith.constant 0.000000e+00 : f32
      %12 = vector.broadcast %cst_10 : f32 to vector<8x128xf32>
      %c0_11 = arith.constant 0 : index
      %c0_12 = arith.constant 0 : index
      %13 = vector.load %arg7[%c0_11, %c0_12] : memref<8x128xf32, #tpu.memory_space<vmem>>, vector<8x128xf32>
      tpu.vector_store %arg7[%c0_11, %c0_12], %12 {strides = array<i32>} : memref<8x128xf32, #tpu.memory_space<vmem>>, vector<8x128xf32>,
    } else {
    }
    %c0 = arith.constant 0 : index
    %c0_1 = arith.constant 0 : index
    %3 = vector.load %arg4[%c0, %c0_1] : memref<8x128xf32, #tpu.memory_space<vmem>>, vector<8x128xf32>
    %c0_2 = arith.constant 0 : index
    %c0_3 = arith.constant 0 : index
    %4 = vector.load %arg7[%c0_2, %c0_3] : memref<8x128xf32, #tpu.memory_space<vmem>>, vector<8x128xf32>
    %c0_4 = arith.constant 0 : index
    %c0_5 = arith.constant 0 : index
    %5 = vector.load %arg5[%c0_4, %c0_5] : memref<128x128xf32, #tpu.memory_space<vmem>>, vector<128x128xf32>
    %cst = arith.constant dense<0.000000e+00> : vector<8x128xf32>
    %6 = tpu.matmul %3, %5, %cst {dimension_numbers = #tpu.dot_dimension_numbers<[1], [0], [0], [1], [0, 0, 1, 1], [], []>} : vector<8x128xf32>, vector<128x128xf32>, vector<8x128xf32> -> vector<8x128xf32>
    %7 = arith.addf %4, %6 : vector<8x128xf32>
    %c0_6 = arith.constant 0 : index
    %c0_7 = arith.constant 0 : index
    %8 = vector.load %arg7[%c0_6, %c0_7] : memref<8x128xf32, #tpu.memory_space<vmem>>, vector<8x128xf32>
    tpu.vector_store %arg7[%c0_6, %c0_7], %7 {strides = array<i32>} : memref<8x128xf32, #tpu.memory_space<vmem>>, vector<8x128xf32>,
    %c0_i32_8 = arith.constant 0 : i32
    %9 = arith.cmpi eq, %arg2, %c0_i32_8 : i32
    %10 = arith.extui %9 : i1 to i32
    %c0_i32_9 = arith.constant 0 : i32
    %11 = arith.cmpi ne, %10, %c0_i32_9 : i32
    scf.if %11 {
      %c0_10 = arith.constant 0 : index
      %c0_11 = arith.constant 0 : index
      %12 = vector.load %arg7[%c0_10, %c0_11] : memref<8x128xf32, #tpu.memory_space<vmem>>, vector<8x128xf32>
      %c0_12 = arith.constant 0 : index
      %c0_13 = arith.constant 0 : index
      %13 = vector.load %arg6[%c0_12, %c0_13] : memref<8x128xf32, #tpu.memory_space<vmem>>, vector<8x128xf32>
      tpu.vector_store %arg6[%c0_12, %c0_13], %12 {strides = array<i32>} : memref<8x128xf32, #tpu.memory_space<vmem>>, vector<8x128xf32>,
    } else {
    }
    return
  }
  func.func @transform_0(%arg0: i32, %arg1: i32, %arg2: i32, %arg3: memref<1xi32, #tpu.memory_space<smem>>) -> (i32, i32) {
    %c0_i32 = arith.constant 0 : i32
    return %arg0, %arg2 : i32, i32
  }
  func.func @transform_1(%arg0: i32, %arg1: i32, %arg2: i32, %arg3: memref<1xi32, #tpu.memory_space<smem>>) -> (i32, i32) {
    %c0_i32 = arith.constant 0 : i32
    return %arg2, %arg1 : i32, i32
  }
  func.func @transform_2(%arg0: i32, %arg1: i32, %arg2: i32, %arg3: memref<1xi32, #tpu.memory_space<smem>>) -> (i32, i32) {
    %c0_i32 = arith.constant 0 : i32
    return %arg0, %arg1 : i32, i32
  }
}

</mosaic_0001>

<bundles_post_ra>
// kernel: tpu_custom_call.1
= control target key start
LH: loop header
LB: loop body
LE: loop exit
PB: predicated region body
PF: predicated region fallthrough
CT: control target
= control target key end

     0   :  { %9 = vsyncpa [#allocation6], 0  ;;  %s383_s0 = inlined_call_operand.<no memory space> [shape: s32[1], index: 0, kind: input, shape index: {}]   ;;  %s384_s1 = inlined_call_operand.hbm [shape: f32[8,128], index: 1, kind: input, shape index: {}]   ;;  %s385_s2 = inlined_call_operand.hbm [shape: f32[128,128], index: 2, kind: input, shape index: {}]   ;;  %s386_s3 = inlined_call_operand.hbm [shape: f32[8,128], index: 3, kind: output, shape index: {}]  }
   0x1   :  { %10 = vsyncpa [#allocation9], 0 }
   0x2   :  { %11 = vsyncpa [#allocation7], 0  ;;  %s312_s12 = smov [#allocation5]   ;;  %s313_s14 = smov [#allocation8]  }
   0x3   :  { %s18_s13 = sshll.u32 %s312_s12, 4  ;;  %s27_s15 = sshll.u32 %s313_s14, 4  ;;  %s19_s13 = int_to_ptr.vmem [resolvable:$true] %s18_s13  ;;  %s340_s15 = int_to_ptr.vmem [resolvable:$true] %s27_s15 }
   0x4   :  { %s240_s17 = scalar_lea.hbm %s384_s1, 128 }
   0x5   :  { %p241_p0 = scmp.ne.s32.totalorder %s384_s1, %s240_s17  ;;  %p244_p1 = scmp.lt.u32.totalorder %s240_s17, %s384_s1 }
   0x7   :  { %p246_p2 = pnand %p244_p1, %p241_p0 }
   0x9   :  { %249 = shalt.err (!%p246_p2)
}
   0xa   :  { %s250_s22 = scalar_lea.vmem %s19_s13, 128  ;;  %p255_p4 = scmp.lt.s32.totalorder %s19_s13, %s19_s13 }
   0xb   :  { %p251_p3 = scmp.ne.s32.totalorder %s19_s13, %s250_s22  ;;  %p256_p5 = scmp.lt.s32.totalorder %s250_s22, %s250_s22 }
   0xd   :  { %p257_p6 = por %p256_p5, %p255_p4 }
   0xf   :  { %p258_p7 = pnand %p257_p6, %p251_p3 }
  0x11   :  { %261 = shalt.err (!%p258_p7)
}
  0x12   :  { %21 = dma.hbm_to_vmem [thread:$0]  %s384_s1, 128, %s19_s13, [#allocation6]  }
  0x13   :  { %s262_s27 = scalar_lea.hbm %s385_s2, 2048 }
  0x14   :  { %p263_p8 = scmp.ne.s32.totalorder %s385_s2, %s262_s27  ;;  %p266_p9 = scmp.lt.u32.totalorder %s262_s27, %s385_s2 }
  0x16   :  { %p268_p10 = pnand %p266_p9, %p263_p8 }
  0x18   :  { %271 = shalt.err (!%p268_p10)
}
  0x19   :  { %s272_s5 = scalar_lea.vmem %s340_s15, 2048  ;;  %p277_p12 = scmp.lt.s32.totalorder %s340_s15, %s340_s15 }
  0x1a   :  { %p273_p11 = scmp.ne.s32.totalorder %s340_s15, %s272_s5  ;;  %p278_p13 = scmp.lt.s32.totalorder %s272_s5, %s272_s5 }
  0x1c   :  { %p279_p0 = por %p278_p13, %p277_p12 }
  0x1e   :  { %p280_p1 = pnand %p279_p0, %p273_p11 }
  0x20   :  { %283 = shalt.err (!%p280_p1)
}
  0x21   :  { %s314_s1 = smov 128   ;;  %s315_s6 = smov 8  }
  0x22   :  { %33 = dma.hbm_to_vmem [thread:$0]  %s385_s2, 2048, %s340_s15, [#allocation9], %s314_s1, %s314_s1, %s315_s6  }
  0x23   :  { %306 = dma.done.wait [#allocation6], 128  }
  0x24   :  { %307 = vsyncadd [#allocation6], 4294967168 }
  0x25   :  { %308 = dma.done.wait [#allocation9], 2048  }
  0x26   :  { %309 = vsyncadd [#allocation9], 4294965248  ;;  %v316_v0 = vmov 0.0|0.0   ;;  %vm317_vm0 = vmmov 0   ;;  %v318_v1 = vmov 0.0   ;;  %v47_v2 = vld [vmem:[#allocation8] sm:$0xff] }
  0x27   :  { %208 = vmatprep.subr.bf16.mxu0 %v316_v0  ;;  %205 = vmatprep.mubr.msk.f32.mxu0 %vm317_vm0, %v318_v1  ;;  %v48_v3 = vld [vmem:[#allocation8 + $0x8] sm:$0xff]  ;;  %v49_v4 = vld [vmem:[#allocation8 + $0x10] sm:$0xff]  ;;  %v50_v6 = vld [vmem:[#allocation8 + $0x18] sm:$0xff]  ;;  %s319_s2 = smov [#allocation10]  }
  0x28   :  { %v209_v5 = vpack.c.bf16 %v48_v3, %v47_v2  ;;  %v212_v7 = vpack.c.bf16 %v50_v6, %v49_v4  ;;  %v51_v8 = vld [vmem:[#allocation8 + $0x20] sm:$0xff]  ;;  %v52_v9 = vld [vmem:[#allocation8 + $0x28] sm:$0xff]  ;;  %v53_v11 = vld [vmem:[#allocation8 + $0x30] sm:$0xff]  ;;  %s146_s9 = sshll.u32 %s319_s2, 4  ;;  %s147_s9 = int_to_ptr.vmem [resolvable:$true] %s146_s9 }
  0x29   :  { %v215_v10 = vpack.c.bf16 %v52_v9, %v51_v8  ;;  %v54_v12 = vld [vmem:[#allocation8 + $0x38] sm:$0xff]  ;;  %v55_v14 = vld [vmem:[#allocation8 + $0x40] sm:$0xff]  ;;  %v56_v15 = vld [vmem:[#allocation8 + $0x48] sm:$0xff]  ;;  %s284_s10 = scalar_lea.vmem %s147_s9, 128  ;;  %p289_p3 = scmp.lt.s32.totalorder %s147_s9, %s147_s9 }
  0x2a   :  { %210 = vmatpush3.bf16.msra.mxu0 %v209_v5  ;;  %v218_v13 = vpack.c.bf16 %v54_v12, %v53_v11  ;;  %v221_v16 = vpack.c.bf16 %v56_v15, %v55_v14  ;;  %v57_v17 = vld [vmem:[#allocation8 + $0x50] sm:$0xff]  ;;  %v58_v18 = vld [vmem:[#allocation8 + $0x58] sm:$0xff]  ;;  %v59_v20 = vld [vmem:[#allocation8 + $0x60] sm:$0xff]  ;;  %p285_p2 = scmp.ne.s32.totalorder %s147_s9, %s284_s10  ;;  %p290_p4 = scmp.lt.s32.totalorder %s284_s10, %s284_s10 }
  0x2b   :  { %211 = vmatprep.subr.bf16.mxu0 %v316_v0  ;;  %v224_v19 = vpack.c.bf16 %v58_v18, %v57_v17  ;;  %v60_v21 = vld [vmem:[#allocation8 + $0x68] sm:$0xff]  ;;  %v61_v23 = vld [vmem:[#allocation8 + $0x70] sm:$0xff]  ;;  %v62_v24 = vld [vmem:[#allocation8 + $0x78] sm:$0xff] }
  0x2c   :  { %v227_v22 = vpack.c.bf16 %v60_v21, %v59_v20  ;;  %v230_v25 = vpack.c.bf16 %v62_v24, %v61_v23  ;;  %v45_v26 = vld [vmem:[#allocation5] sm:$0xff]  ;;  %p291_p5 = por %p290_p4, %p289_p3 }
  0x2e   :  { %213 = vmatpush3.bf16.msra.mxu0 %v212_v7  ;;  %p292_p6 = pnand %p291_p5, %p285_p2 }
  0x2f   :  { %214 = vmatprep.subr.bf16.mxu0 %v316_v0 }
  0x32   :  { %216 = vmatpush3.bf16.msra.mxu0 %v215_v10 }
  0x33   :  { %217 = vmatprep.subr.bf16.mxu0 %v316_v0 }
  0x36   :  { %219 = vmatpush3.bf16.msra.mxu0 %v218_v13 }
  0x37   :  { %220 = vmatprep.subr.bf16.mxu0 %v316_v0 }
  0x3a   :  { %222 = vmatpush3.bf16.msra.mxu0 %v221_v16 }
  0x3b   :  { %223 = vmatprep.subr.bf16.mxu0 %v316_v0 }
  0x3e   :  { %225 = vmatpush3.bf16.msra.mxu0 %v224_v19 }
  0x3f   :  { %226 = vmatprep.subr.bf16.mxu0 %v316_v0 }
  0x42   :  { %228 = vmatpush3.bf16.msra.mxu0 %v227_v22 }
  0x43   :  { %229 = vmatprep.subr.bf16.mxu0 %v316_v0 }
  0x46   :  { %231 = vmatpush3.bf16.msra.mxu0 %v230_v25 }
  0x49   :  { %206 = vmatmul.mubr.f32.vlgmr.msra.gmra.mrb[0].mxu0 %v45_v26 }
 0x11c   :  { %v129_v27 = vpop.f32.mrb[0].mxu0 }
 0x11d   :  { %139 = vst [vmem:[#allocation10] sm:$0xff] %v129_v27  ;;  %v207_v28 = vpop.f32.mrb[1].mxu0 }
 0x11e   :  { %295 = shalt.err (!%p292_p6)
}
 0x11f   :  { %s296_s13 = scalar_lea.hbm %s386_s3, 128 }
 0x120   :  { %p297_p7 = scmp.ne.s32.totalorder %s386_s3, %s296_s13  ;;  %p300_p8 = scmp.lt.u32.totalorder %s296_s13, %s386_s3 }
 0x122   :  { %p302_p9 = pnand %p300_p8, %p297_p7 }
 0x124   :  { %305 = shalt.err (!%p302_p9)
}
 0x125   :  { %149 = dma.vmem_to_hbm [thread:$0]  %s147_s9, 128, %s386_s3, [#allocation7]  }
 0x126   :  { %310 = dma.done.wait [#allocation7], 128  }
 0x127   :  { %311 = vsyncadd [#allocation7], 4294967168 }
 0x128   :  { %153 = vsyncpa [#allocation6], 1 }
 0x129   :  { %154 = vsyncpa [#allocation9], 1 }
 0x12a   :  { %155 = vsyncpa [#allocation7], 1 }

</bundles_post_ra>
